<compile_context>
chip_gen: v5e
topology: v5e:2x2
jax: 0.10.0
libtpu: 0.0.40
codegen_flags: <defaults>
</compile_context>

<pallas_src>
import functools

import jax
import jax.numpy as jnp
from jax.experimental import pallas as pl
from jax.experimental.pallas import tpu as pltpu


def _round_up(x, m):
    return (x + m - 1) // m * m


def _vmem_capacity_bytes():
    try:
        return pltpu.get_tpu_info().vmem_capacity_bytes
    except Exception:
        return 64 << 20          # v7x-conservative default


def _pick_tile_m(m):
    """Largest sublane-aligned tile that divides M, yields >=2 grid tiles
    (v7x has 2 TensorCores under "parallel" semantics) and fits VMEM."""
    cap = 1024 if _vmem_capacity_bytes() >= (96 << 20) else 512
    if m <= 8:
        return m
    upper = min(cap, max(8, m // 2))
    upper -= upper % 8
    for t in range(upper, 7, -8):
        if m % t == 0:
            return t
    return min(cap, m)           # fallback: ragged trailing tile (Pallas edge-masks)


def _pick_tile_b(b):
    if b <= 512:
        return b
    for t in range(512, 7, -8):
        if b % t == 0:
            return t
    return 512


# ----------------------------- Pallas kernels ------------------------------ #

def _proj_kernel(x_ref, w_ref, b_ref, mu_ref, logvar_ref, alpha_ref, *, hp):
    """Fused mu/logvar/alpha projection: one MXU matmul per M-tile.

    x_ref:      (TILE_M, H)     f32  (bf16 cast on the VPU right before the dot)
    w_ref:      (H, WCOLS)      bf16 (VMEM-resident, single-buffered)
    b_ref:      (1, WCOLS)      f32
    mu_ref:     (TILE_M, HOUT)  f32
    logvar_ref: (TILE_M, HOUT)  f32
    alpha_ref:  (TILE_M, 128)   f32  raw alpha logit in lane 0 (exp applied later)
    """
    x = x_ref[...].astype(jnp.bfloat16)
    y = jnp.dot(x, w_ref[...], preferred_element_type=jnp.float32) + b_ref[...]
    hout = mu_ref.shape[1]
    mu_ref[...] = y[:, :hout]
    logvar_ref[...] = y[:, hp:hp + hout]
    alpha_ref[...] = y[:, 2 * hp:2 * hp + 128]


def _dirichlet_kernel(logit_ref, mask_ref, pi_ref, stats_ref):
    """Eval-mode reparameterize_dirichlet + masked summary reductions.

    Layout: [B, Nl] with Nl on the lane axis; reductions along axis=-1.
    logit_ref: (TB, Nl) f32    raw alpha logits (alpha = exp(logit))
    mask_ref:  (TB, Nl) int8   (1 = padded)
    pi_ref:    (TB, Nl) f32
    stats_ref: (TB, 128) f32   lane 0 = alpha0, lane 1 = nonzero count, lane 2 = K0
    """
    mask = mask_ref[...] != 0
    alpha = jnp.exp(logit_ref[...])               # Exponential activation

    a_cl = jnp.maximum(alpha, 1e-14)              # torch.clamp(min=1e-14)
    gammas = jnp.where(a_cl > 0.1, a_cl, 0.0)     # nn.Threshold(0.1, 0)
    amask = jnp.logical_or(mask, gammas <= 0.0)
    gammas = jnp.where(amask, 0.0, gammas)        # masked_fill_

    norm = jnp.sum(gammas, axis=-1, keepdims=True) + 1e-14
    pi = gammas / norm
    pi_ref[...] = pi

    alpha0 = jnp.sum(jnp.where(mask, 0.0, alpha), axis=-1, keepdims=True)
    pim = jnp.where(mask, 0.0, pi)
    nzc = jnp.sum((pim != 0.0).astype(jnp.float32), axis=-1, keepdims=True)
    k0 = jnp.sum(jnp.logical_not(mask).astype(jnp.float32), axis=-1,
                 keepdims=True)

    tb = pi.shape[0]
    lane = jax.lax.broadcasted_iota(jnp.int32, (tb, 128), 1)
    stats_ref[...] = jnp.where(lane == 0, alpha0,
                     jnp.where(lane == 1, nzc,
                     jnp.where(lane == 2, k0, 0.0)))


# ------------------------------- wrappers ---------------------------------- #

def _proj_call(x2d_f32, w_fused_bf16, b_fused_f32, hout, hp):
    m, h = x2d_f32.shape
    wcols = w_fused_bf16.shape[1]
    assert wcols == 2 * hp + 128

    tile_m = _pick_tile_m(m)
    grid = (pl.cdiv(m, tile_m),)

    # Real VMEM footprint: weights/bias single-buffered, x/outputs 2-deep, plus
    # headroom for the in-kernel (tile_m, wcols) f32 intermediate.
    vmem_need = (2 * tile_m * h * 4
                 + h * wcols * 2 + wcols * 4
                 + 2 * 2 * tile_m * hout * 4
                 + 2 * tile_m * 128 * 4
                 + tile_m * wcols * 4)
    vmem_limit = int(min(max(vmem_need * 3 // 2 + (2 << 20), 8 << 20), 64 << 20))

    kernel = functools.partial(_proj_kernel, hp=hp)
    bytes_accessed = (m * h * 4                    # x (f32, read once)
                      + h * wcols * 2 + wcols * 4  # fused bf16 weight + f32 bias
                      + m * (2 * hout + 128) * 4)  # exact-size outputs

    resident = dict(pipeline_mode=pl.Buffered(1))  # no double-buffer for revisited blocks
    return pl.pallas_call(
        kernel,
        out_shape=(jax.ShapeDtypeStruct((m, hout), jnp.float32),
                   jax.ShapeDtypeStruct((m, hout), jnp.float32),
                   jax.ShapeDtypeStruct((m, 128), jnp.float32)),
        grid_spec=pltpu.PrefetchScalarGridSpec(
            num_scalar_prefetch=0,
            grid=grid,
            in_specs=[
                pl.BlockSpec((tile_m, h), lambda i: (i, 0)),
                pl.BlockSpec((h, wcols), lambda i: (0, 0), **resident),
                pl.BlockSpec((1, wcols), lambda i: (0, 0), **resident),
            ],
            out_specs=(
                pl.BlockSpec((tile_m, hout), lambda i: (i, 0)),
                pl.BlockSpec((tile_m, hout), lambda i: (i, 0)),
                pl.BlockSpec((tile_m, 128), lambda i: (i, 0)),
            ),
        ),
        compiler_params=pltpu.CompilerParams(
            dimension_semantics=("parallel",),
            vmem_limit_bytes=vmem_limit,
        ),
        cost_estimate=pl.CostEstimate(
            flops=2 * m * h * wcols,
            transcendentals=0,
            bytes_accessed=bytes_accessed,
        ),
    )(x2d_f32, w_fused_bf16, b_fused_f32)


def _dirichlet_call(logit_bn, mask_bn_i8):
    b, nl = logit_bn.shape
    tile_b = _pick_tile_b(b)
    grid = (pl.cdiv(b, tile_b),)
    return pl.pallas_call(
        _dirichlet_kernel,
        out_shape=(jax.ShapeDtypeStruct((b, nl), jnp.float32),
                   jax.ShapeDtypeStruct((b, 128), jnp.float32)),
        grid_spec=pltpu.PrefetchScalarGridSpec(
            num_scalar_prefetch=0,
            grid=grid,
            in_specs=[pl.BlockSpec((tile_b, nl), lambda i: (i, 0)),
                      pl.BlockSpec((tile_b, nl), lambda i: (i, 0))],
            out_specs=(pl.BlockSpec((tile_b, nl), lambda i: (i, 0)),
                       pl.BlockSpec((tile_b, 128), lambda i: (i, 0))),
        ),
        compiler_params=pltpu.CompilerParams(
            dimension_semantics=("parallel",)),
    )(logit_bn, mask_bn_i8)


# ------------------------- parameter preparation --------------------------- #

def init_nvib_params(key, size_in, size_out):
    # Deterministic synthetic init mimicking nn.Linear's U(-1/sqrt(in), 1/sqrt(in)).
    ks = jax.random.split(key, 6)
    s = 1.0 / jnp.sqrt(jnp.float32(size_in))
    u = lambda k, shp: jax.random.uniform(k, shp, jnp.float32, -s, s)
    return {
        'w_mu': u(ks[0], (size_in, size_out)),
        'b_mu': u(ks[1], (1, size_out)),
        'w_logvar': u(ks[2], (size_in, size_out)),
        'b_logvar': u(ks[3], (1, size_out)),
        'w_alpha': u(ks[4], (size_in, 1)),
        'b_alpha': u(ks[5], (1, 1)),
        'prior_mu': jnp.zeros((size_out,), jnp.float32),
        'prior_var': jnp.ones((size_out,), jnp.float32),
        'prior_alpha': jnp.ones((1,), jnp.float32),
    }


def prepare_nvib_params(params):
    """One-time packing: [w_mu | pad | w_logvar | pad | w_alpha | pad-to-128]
    as a lane-aligned bf16 weight + f32 bias, plus precomputed prior logs.
    Call ONCE at param-load time and pass the result into nvib_forward."""
    h, hout = params['w_mu'].shape
    hp = _round_up(hout, 128)
    wcols = 2 * hp + 128
    w = jnp.zeros((h, wcols), jnp.float32)
    w = w.at[:, :hout].set(params['w_mu'])
    w = w.at[:, hp:hp + hout].set(params['w_logvar'])
    w = w.at[:, 2 * hp:2 * hp + 1].set(params['w_alpha'])
    bias = jnp.zeros((1, wcols), jnp.float32)
    bias = bias.at[:, :hout].set(params['b_mu'])
    bias = bias.at[:, hp:hp + hout].set(params['b_logvar'])
    bias = bias.at[:, 2 * hp:2 * hp + 1].set(params['b_alpha'])
    return {
        'w_fused_bf16': w.astype(jnp.bfloat16),
        'b_fused_f32': bias,
        'prior_mu': params['prior_mu'],
        'log_prior_var': jnp.log(params['prior_var']),
        'prior_alpha': params['prior_alpha'],
        'log_prior_alpha': jnp.log(params['prior_alpha']),
    }


# ------------------------------- forward ----------------------------------- #

def nvib_forward(prepared, encoder_output, src_key_padding_mask):
    """Eval-mode Nvib forward.

    prepared:              output of prepare_nvib_params()
    encoder_output:        [Ns, B, H] float32
    src_key_padding_mask:  [B, Ns]    bool (True = padded)
    """
    ns, b, h = encoder_output.shape
    hout = prepared['prior_mu'].shape[0]
    hp = _round_up(hout, 128)
    m = ns * b

    # --- fused projections (one MXU pass, in-kernel bf16 cast, f32 accumulate)
    mu2d, lv2d, alpha_logit2d = _proj_call(
        encoder_output.reshape(m, h),
        prepared['w_fused_bf16'], prepared['b_fused_f32'],
        hout=hout, hp=hp)

    mu_enc = mu2d.reshape(ns, b, hout)
    logvar_enc = lv2d.reshape(ns, b, hout)
    alpha_logit_enc = alpha_logit2d[:, 0].reshape(ns, b)          # [Ns, B]

    # --- prepend the prior ("unknown") component, Nl = Ns + 1 ---------------
    # TODO(synk): element-offset output indexing would let the kernel write
    # rows 1..Nl directly; Blocked BlockSpecs can't express it, keep the concat.
    unknown_mu = jnp.broadcast_to(prepared['prior_mu'][None, None, :],
                                  (1, b, hout))
    unknown_logvar = jnp.broadcast_to(prepared['log_prior_var'][None, None, :],
                                      (1, b, hout))
    unknown_alpha = jnp.broadcast_to(prepared['prior_alpha'][None, None, :],
                                     (1, b, 1))
    mu = jnp.concatenate([unknown_mu, mu_enc], axis=0)            # [Nl,B,H]
    logvar = jnp.concatenate([unknown_logvar, logvar_enc], axis=0)
    alpha = jnp.concatenate(
        [unknown_alpha, jnp.exp(alpha_logit_enc)[:, :, None]], axis=0)  # [Nl,B,1]

    # padding mask in [B, Nl] layout (prior column is never masked)
    mask_b_nl = jnp.concatenate(
        [jnp.zeros((b, 1), dtype=jnp.bool_), src_key_padding_mask], axis=1)

    # eval mode: z = mu (reparameterize_gaussian test branch)
    z = mu

    # --- Dirichlet reparameterisation in lane-dense [B, Nl] layout ----------
    # exp() is applied inside the kernel on the (B, Nl) logits (prior column
    # carries log(prior_alpha) so exp recovers prior_alpha exactly).
    alpha_bn_logit = jnp.concatenate(
        [jnp.broadcast_to(prepared['log_prior_alpha'][None, :], (b, 1)),
         jnp.transpose(alpha_logit_enc, (1, 0))], axis=1)          # [B, Nl]
    pi_bn, stats = _dirichlet_call(alpha_bn_logit, mask_b_nl.astype(jnp.int8))
    pi = jnp.transpose(pi_bn, (1, 0))[:, :, None]                  # [Nl,B,1]

    alpha0 = stats[:, 0]
    nzc = stats[:, 1]
    k0 = stats[:, 2]
    avg_num_vec = jnp.mean(nzc)
    avg_prop_vec = jnp.mean(nzc / k0)
    avg_alpha0 = jnp.mean(alpha0)

    return {
        'z': (z, pi, mu, logvar),
        'pi': pi,
        'memory_key_padding_mask': mask_b_nl,
        'mu': mu,
        'logvar': logvar,
        'alpha': alpha,
        'avg_num_vec': avg_num_vec,
        'avg_prop_vec': avg_prop_vec,
        'avg_alpha0': avg_alpha0,
    }


# ------------------------- pure-JAX reference check ------------------------ #

def _nvib_forward_ref(params, encoder_output, src_key_padding_mask):
    """Reference with the same bf16 rounding as the kernel (f32 accumulate)."""
    ns, b, h = encoder_output.shape
    xb = encoder_output.astype(jnp.bfloat16).astype(jnp.float32)
    wmu = params['w_mu'].astype(jnp.bfloat16).astype(jnp.float32)
    wlv = params['w_logvar'].astype(jnp.bfloat16).astype(jnp.float32)
    wal = params['w_alpha'].astype(jnp.bfloat16).astype(jnp.float32)
    mu = xb @ wmu + params['b_mu'][0]
    logvar = xb @ wlv + params['b_logvar'][0]
    alpha = jnp.exp(xb @ wal + params['b_alpha'][0])
    mu = jnp.concatenate(
        [jnp.broadcast_to(params['prior_mu'], (1, b, h)), mu], 0)
    logvar = jnp.concatenate(
        [jnp.broadcast_to(jnp.log(params['prior_var']), (1, b, h)), logvar], 0)
    alpha = jnp.concatenate(
        [jnp.broadcast_to(params['prior_alpha'], (1, b, 1)), alpha], 0)
    mask = jnp.concatenate(
        [jnp.zeros((1, b, 1), bool),
         jnp.transpose(src_key_padding_mask, (1, 0))[:, :, None]], 0)
    a_cl = jnp.maximum(alpha, 1e-14)
    gammas = jnp.where(a_cl > 0.1, a_cl, 0.0)
    amask = jnp.logical_or(mask, gammas <= 0.0)
    gammas = jnp.where(amask, 0.0, gammas)
    pi = gammas / (jnp.sum(gammas, 0, keepdims=True) + 1e-14)
    return mu, logvar, alpha, pi


# ----------------------------------- main ----------------------------------- #

if __name__ == "__main__":
    Ns, B, H = 8, 2, 32          # size_in = size_out = H
    key = jax.random.PRNGKey(0)
    kp, kx = jax.random.split(key)

    params = init_nvib_params(kp, H, H)
    prepared = prepare_nvib_params(params)          # one-time fusion + bf16 cast
    encoder_output = jax.random.normal(kx, (Ns, B, H), jnp.float32)
    src_key_padding_mask = jnp.zeros((B, Ns), dtype=bool).at[1, 6:].set(True)

    fwd = jax.jit(nvib_forward)
    out = fwd(prepared, encoder_output, src_key_padding_mask)
    out = jax.block_until_ready(out)

    mu_r, lv_r, al_r, pi_r = _nvib_forward_ref(
        params, encoder_output, src_key_padding_mask)
    assert jnp.allclose(out['mu'], mu_r, atol=1e-3, rtol=1e-3)
    assert jnp.allclose(out['logvar'], lv_r, atol=1e-3, rtol=1e-3)
    assert jnp.allclose(out['alpha'], al_r, atol=1e-3, rtol=1e-3)
    assert jnp.allclose(out['pi'], pi_r, atol=1e-3, rtol=1e-3)
    assert out['memory_key_padding_mask'].shape == (B, Ns + 1)
    assert out['memory_key_padding_mask'].dtype == jnp.bool_

    print("KERNEL_OK")
</pallas_src>

<mosaic_0001>
module attributes {stable_mosaic.version = 11 : i64} {
  func.func @_proj_kernel(%arg0: i32, %arg1: memref<8x32xf32, #tpu.memory_space<vmem>>, %arg2: memref<32x384xbf16, #tpu.memory_space<vmem>>, %arg3: memref<1x384xf32, #tpu.memory_space<vmem>>, %arg4: memref<8x32xf32, #tpu.memory_space<vmem>>, %arg5: memref<8x32xf32, #tpu.memory_space<vmem>>, %arg6: memref<8x128xf32, #tpu.memory_space<vmem>>) attributes {dimension_semantics = [#tpu.dimension_semantics<parallel>], iteration_bounds = array<i64: 2>, scalar_prefetch = 0 : i64, scratch_operands = 0 : i64, tpu.core_type = #tpu.core_type<tc>, window_params = [{transform_indices = @transform_0, window_bounds = array<i64: 8, 32>}, {pipeline_mode = #tpu.pipeline_mode<synchronous>, transform_indices = @transform_1, window_bounds = array<i64: 32, 384>}, {pipeline_mode = #tpu.pipeline_mode<synchronous>, transform_indices = @transform_2, window_bounds = array<i64: 1, 384>}, {transform_indices = @transform_3, window_bounds = array<i64: 8, 32>}, {transform_indices = @transform_4, window_bounds = array<i64: 8, 32>}, {transform_indices = @transform_5, window_bounds = array<i64: 8, 128>}]} {
    %c0 = arith.constant 0 : index
    %c0_0 = arith.constant 0 : index
    %0 = vector.load %arg1[%c0, %c0_0] : memref<8x32xf32, #tpu.memory_space<vmem>>, vector<8x32xf32>
    %1 = arith.truncf %0 : vector<8x32xf32> to vector<8x32xbf16>
    %c0_1 = arith.constant 0 : index
    %c0_2 = arith.constant 0 : index
    %2 = vector.load %arg2[%c0_1, %c0_2] : memref<32x384xbf16, #tpu.memory_space<vmem>>, vector<32x384xbf16>
    %cst = arith.constant dense<0.000000e+00> : vector<8x384xf32>
    %3 = tpu.matmul %1, %2, %cst {dimension_numbers = #tpu.dot_dimension_numbers<[1], [0], [0], [1], [0, 0, 1, 1], [], []>} : vector<8x32xbf16>, vector<32x384xbf16>, vector<8x384xf32> -> vector<8x384xf32>
    %c0_3 = arith.constant 0 : index
    %c0_4 = arith.constant 0 : index
    %4 = vector.load %arg3[%c0_3, %c0_4] : memref<1x384xf32, #tpu.memory_space<vmem>>, vector<1x384xf32>
    %5 = vector.broadcast %4 : vector<1x384xf32> to vector<8x384xf32>
    %6 = arith.addf %3, %5 : vector<8x384xf32>
    %7 = vector.extract_strided_slice %6 {offsets = [0, 0], sizes = [8, 32], strides = [1, 1]} : vector<8x384xf32> to vector<8x32xf32>
    %c0_5 = arith.constant 0 : index
    %c0_6 = arith.constant 0 : index
    %8 = vector.load %arg4[%c0_5, %c0_6] : memref<8x32xf32, #tpu.memory_space<vmem>>, vector<8x32xf32>
    tpu.vector_store %arg4[%c0_5, %c0_6], %7 {strides = array<i32>} : memref<8x32xf32, #tpu.memory_space<vmem>>, vector<8x32xf32>,
    %9 = vector.extract_strided_slice %6 {offsets = [0, 128], sizes = [8, 32], strides = [1, 1]} : vector<8x384xf32> to vector<8x32xf32>
    %c0_7 = arith.constant 0 : index
    %c0_8 = arith.constant 0 : index
    %10 = vector.load %arg5[%c0_7, %c0_8] : memref<8x32xf32, #tpu.memory_space<vmem>>, vector<8x32xf32>
    tpu.vector_store %arg5[%c0_7, %c0_8], %9 {strides = array<i32>} : memref<8x32xf32, #tpu.memory_space<vmem>>, vector<8x32xf32>,
    %11 = vector.extract_strided_slice %6 {offsets = [0, 256], sizes = [8, 128], strides = [1, 1]} : vector<8x384xf32> to vector<8x128xf32>
    %c0_9 = arith.constant 0 : index
    %c0_10 = arith.constant 0 : index
    %12 = vector.load %arg6[%c0_9, %c0_10] : memref<8x128xf32, #tpu.memory_space<vmem>>, vector<8x128xf32>
    tpu.vector_store %arg6[%c0_9, %c0_10], %11 {strides = array<i32>} : memref<8x128xf32, #tpu.memory_space<vmem>>, vector<8x128xf32>,
    return
  }
  func.func @transform_0(%arg0: i32) -> (i32, i32) {
    %c0_i32 = arith.constant 0 : i32
    %c0_i32_0 = arith.constant 0 : i32
    return %arg0, %c0_i32 : i32, i32
  }
  func.func @transform_1(%arg0: i32) -> (i32, i32) {
    %c0_i32 = arith.constant 0 : i32
    %c0_i32_0 = arith.constant 0 : i32
    %c0_i32_1 = arith.constant 0 : i32
    return %c0_i32, %c0_i32_0 : i32, i32
  }
  func.func @transform_2(%arg0: i32) -> (i32, i32) {
    %c0_i32 = arith.constant 0 : i32
    %c0_i32_0 = arith.constant 0 : i32
    %c0_i32_1 = arith.constant 0 : i32
    return %c0_i32, %c0_i32_0 : i32, i32
  }
  func.func @transform_3(%arg0: i32) -> (i32, i32) {
    %c0_i32 = arith.constant 0 : i32
    %c0_i32_0 = arith.constant 0 : i32
    return %arg0, %c0_i32 : i32, i32
  }
  func.func @transform_4(%arg0: i32) -> (i32, i32) {
    %c0_i32 = arith.constant 0 : i32
    %c0_i32_0 = arith.constant 0 : i32
    return %arg0, %c0_i32 : i32, i32
  }
  func.func @transform_5(%arg0: i32) -> (i32, i32) {
    %c0_i32 = arith.constant 0 : i32
    %c0_i32_0 = arith.constant 0 : i32
    return %arg0, %c0_i32 : i32, i32
  }
}

module attributes {stable_mosaic.version = 11 : i64} {
  func.func @_dirichlet_kernel(%arg0: i32, %arg1: memref<2x9xf32, #tpu.memory_space<vmem>>, %arg2: memref<2x9xi8, #tpu.memory_space<vmem>>, %arg3: memref<2x9xf32, #tpu.memory_space<vmem>>, %arg4: memref<2x128xf32, #tpu.memory_space<vmem>>) attributes {dimension_semantics = [#tpu.dimension_semantics<parallel>], iteration_bounds = array<i64: 1>, scalar_prefetch = 0 : i64, scratch_operands = 0 : i64, tpu.core_type = #tpu.core_type<tc>, window_params = [{transform_indices = @transform_0, window_bounds = array<i64: 2, 9>}, {transform_indices = @transform_1, window_bounds = array<i64: 2, 9>}, {transform_indices = @transform_2, window_bounds = array<i64: 2, 9>}, {transform_indices = @transform_3, window_bounds = array<i64: 2, 128>}]} {
    %c0 = arith.constant 0 : index
    %c0_0 = arith.constant 0 : index
    %0 = vector.load %arg2[%c0, %c0_0] : memref<2x9xi8, #tpu.memory_space<vmem>>, vector<2x9xi8>
    %c0_i8 = arith.constant 0 : i8
    %1 = vector.broadcast %c0_i8 : i8 to vector<2x9xi8>
    %2 = arith.cmpi ne, %0, %1 : vector<2x9xi8>
    %c0_1 = arith.constant 0 : index
    %c0_2 = arith.constant 0 : index
    %3 = vector.load %arg1[%c0_1, %c0_2] : memref<2x9xf32, #tpu.memory_space<vmem>>, vector<2x9xf32>
    %4 = math.exp %3 : vector<2x9xf32>
    %cst = arith.constant 9.99999982E-15 : f32
    %5 = vector.broadcast %cst : f32 to vector<2x9xf32>
    %6 = arith.maximumf %4, %5 : vector<2x9xf32>
    %cst_3 = arith.constant 1.000000e-01 : f32
    %7 = vector.broadcast %cst_3 : f32 to vector<2x9xf32>
    %8 = arith.cmpf ogt, %6, %7 : vector<2x9xf32>
    %cst_4 = arith.constant 0.000000e+00 : f32
    %9 = vector.broadcast %cst_4 : f32 to vector<2x9xf32>
    %10 = arith.select %8, %6, %9 : vector<2x9xi1>, vector<2x9xf32>
    %cst_5 = arith.constant 0.000000e+00 : f32
    %11 = vector.broadcast %cst_5 : f32 to vector<2x9xf32>
    %12 = arith.cmpf ole, %10, %11 : vector<2x9xf32>
    %13 = arith.ori %2, %12 : vector<2x9xi1>
    %cst_6 = arith.constant 0.000000e+00 : f32
    %14 = vector.broadcast %cst_6 : f32 to vector<2x9xf32>
    %15 = arith.select %13, %14, %10 : vector<2x9xi1>, vector<2x9xf32>
    %cst_7 = arith.constant dense<0.000000e+00> : vector<2xf32>
    %16 = vector.multi_reduction <add>, %15, %cst_7 [1] : vector<2x9xf32> to vector<2xf32>
    %17 = vector.shape_cast %16 : vector<2xf32> to vector<2x1xf32>
    %cst_8 = arith.constant 9.99999982E-15 : f32
    %18 = vector.broadcast %cst_8 : f32 to vector<2x1xf32>
    %19 = arith.addf %17, %18 : vector<2x1xf32>
    %20 = vector.broadcast %19 : vector<2x1xf32> to vector<2x9xf32>
    %21 = arith.divf %15, %20 : vector<2x9xf32>
    %c0_9 = arith.constant 0 : index
    %c0_10 = arith.constant 0 : index
    %22 = vector.load %arg3[%c0_9, %c0_10] : memref<2x9xf32, #tpu.memory_space<vmem>>, vector<2x9xf32>
    tpu.vector_store %arg3[%c0_9, %c0_10], %21 {strides = array<i32>} : memref<2x9xf32, #tpu.memory_space<vmem>>, vector<2x9xf32>,
    %cst_11 = arith.constant 0.000000e+00 : f32
    %23 = vector.broadcast %cst_11 : f32 to vector<2x9xf32>
    %24 = arith.select %2, %23, %4 : vector<2x9xi1>, vector<2x9xf32>
    %cst_12 = arith.constant dense<0.000000e+00> : vector<2xf32>
    %25 = vector.multi_reduction <add>, %24, %cst_12 [1] : vector<2x9xf32> to vector<2xf32>
    %26 = vector.shape_cast %25 : vector<2xf32> to vector<2x1xf32>
    %cst_13 = arith.constant 0.000000e+00 : f32
    %27 = vector.broadcast %cst_13 : f32 to vector<2x9xf32>
    %28 = arith.select %2, %27, %21 : vector<2x9xi1>, vector<2x9xf32>
    %cst_14 = arith.constant 0.000000e+00 : f32
    %29 = vector.broadcast %cst_14 : f32 to vector<2x9xf32>
    %30 = arith.cmpf one, %28, %29 : vector<2x9xf32>
    %31 = arith.extui %30 : vector<2x9xi1> to vector<2x9xi32>
    %32 = arith.sitofp %31 : vector<2x9xi32> to vector<2x9xf32>
    %cst_15 = arith.constant dense<0.000000e+00> : vector<2xf32>
    %33 = vector.multi_reduction <add>, %32, %cst_15 [1] : vector<2x9xf32> to vector<2xf32>
    %34 = vector.shape_cast %33 : vector<2xf32> to vector<2x1xf32>
    %cst_16 = arith.constant dense<true> : vector<2x9xi1>
    %35 = arith.xori %2, %cst_16 : vector<2x9xi1>
    %36 = arith.extui %35 : vector<2x9xi1> to vector<2x9xi32>
    %37 = arith.sitofp %36 : vector<2x9xi32> to vector<2x9xf32>
    %cst_17 = arith.constant dense<0.000000e+00> : vector<2xf32>
    %38 = vector.multi_reduction <add>, %37, %cst_17 [1] : vector<2x9xf32> to vector<2xf32>
    %39 = vector.shape_cast %38 : vector<2xf32> to vector<2x1xf32>
    %40 = tpu.iota {dimensions = array<i32: 1>} : vector<2x128xi32>
    %c0_i32 = arith.constant 0 : i32
    %41 = vector.broadcast %c0_i32 : i32 to vector<2x128xi32>
    %42 = arith.cmpi eq, %40, %41 : vector<2x128xi32>
    %c1_i32 = arith.constant 1 : i32
    %43 = vector.broadcast %c1_i32 : i32 to vector<2x128xi32>
    %44 = arith.cmpi eq, %40, %43 : vector<2x128xi32>
    %c2_i32 = arith.constant 2 : i32
    %45 = vector.broadcast %c2_i32 : i32 to vector<2x128xi32>
    %46 = arith.cmpi eq, %40, %45 : vector<2x128xi32>
    %cst_18 = arith.constant 0.000000e+00 : f32
    %47 = vector.shape_cast %39 : vector<2x1xf32> to vector<2x1xf32>
    %48 = vector.broadcast %47 : vector<2x1xf32> to vector<2x128xf32>
    %49 = vector.broadcast %cst_18 : f32 to vector<2x128xf32>
    %50 = arith.select %46, %48, %49 : vector<2x128xi1>, vector<2x128xf32>
    %51 = vector.shape_cast %34 : vector<2x1xf32> to vector<2x1xf32>
    %52 = vector.broadcast %51 : vector<2x1xf32> to vector<2x128xf32>
    %53 = arith.select %44, %52, %50 : vector<2x128xi1>, vector<2x128xf32>
    %54 = vector.shape_cast %26 : vector<2x1xf32> to vector<2x1xf32>
    %55 = vector.broadcast %54 : vector<2x1xf32> to vector<2x128xf32>
    %56 = arith.select %42, %55, %53 : vector<2x128xi1>, vector<2x128xf32>
    %c0_19 = arith.constant 0 : index
    %c0_20 = arith.constant 0 : index
    %57 = vector.load %arg4[%c0_19, %c0_20] : memref<2x128xf32, #tpu.memory_space<vmem>>, vector<2x128xf32>
    tpu.vector_store %arg4[%c0_19, %c0_20], %56 {strides = array<i32>} : memref<2x128xf32, #tpu.memory_space<vmem>>, vector<2x128xf32>,
    return
  }
  func.func @transform_0(%arg0: i32) -> (i32, i32) {
    %c0_i32 = arith.constant 0 : i32
    %c0_i32_0 = arith.constant 0 : i32
    return %arg0, %c0_i32 : i32, i32
  }
  func.func @transform_1(%arg0: i32) -> (i32, i32) {
    %c0_i32 = arith.constant 0 : i32
    %c0_i32_0 = arith.constant 0 : i32
    return %arg0, %c0_i32 : i32, i32
  }
  func.func @transform_2(%arg0: i32) -> (i32, i32) {
    %c0_i32 = arith.constant 0 : i32
    %c0_i32_0 = arith.constant 0 : i32
    return %arg0, %c0_i32 : i32, i32
  }
  func.func @transform_3(%arg0: i32) -> (i32, i32) {
    %c0_i32 = arith.constant 0 : i32
    %c0_i32_0 = arith.constant 0 : i32
    return %arg0, %c0_i32 : i32, i32
  }
}

</mosaic_0001>

<bundles_post_ra>
// kernel: squeeze.4
= control target key start
LH: loop header
LB: loop body
LE: loop exit
PB: predicated region body
PF: predicated region fallthrough
CT: control target
= control target key end

     0   :  { %s66_s8 = smov 122   ;;  %s67_s9 = smov 118   ;;  %vm7_vm0 = vcmask 15360   ;;  %s117_s0 = inlined_call_operand.vmem [shape: f32[16], index: 0, kind: input, shape index: {}]   ;;  %s118_s1 = inlined_call_operand.vmem [shape: f32[8,2], index: 1, kind: output, shape index: {}]  }
   0x1   :  { %v4_v0 = vld [vmem:[%s117_s0] sm:$0x1]  ;;  %s65_s0 = smov 126   ;;  %s68_s10 = smov 124  }
   0x2   :  { %5 = vst [vmem:[#allocation0] sm:$0x1] %v4_v0  ;;  %s69_s11 = smov 120   ;;  %s70_s12 = smov 116  }
   0x3   :  { %s71_s13 = smov 114  }
   0x9   :  { %v9_v1 = vld [vmem:[#allocation0] sm:$0x1]  }
   0xa   :  { %v21_v2 = vld [vmem:[#allocation0] sm:$0x1]   ;;  %10 = vrot.lane.b32.xlu0 %v9_v1, %s65_s0 }
   0xb   :  { %22 = vrot.lane.b32.xlu1 %v21_v2, %s66_s8  ;;  %v33_v3 = vld [vmem:[#allocation0] sm:$0x1]  }
   0xc   :  { %34 = vrot.lane.b32.xlu2 %v33_v3, %s67_s9  ;;  %v15_v4 = vld [vmem:[#allocation0] sm:$0x1]  }
   0xd   :  { %v27_v5 = vld [vmem:[#allocation0] sm:$0x1]  }
   0xe   :  { %v39_v6 = vld [vmem:[#allocation0] sm:$0x1]  }
   0xf   :  { %v45_v7 = vld [vmem:[#allocation0] sm:$0x1]  }
  0x10   :  { %v6_v8 = vld [vmem:[#allocation0] sm:$0x1]  }
  0x11   :  { %8 = vst.msk [vmem:[%s118_s1] sm:$0x1] %vm7_vm0, %v6_v8  }
  0x12   :  { %16 = vrot.lane.b32.xlu0 %v15_v4, %s68_s10 }
  0x13   :  { %28 = vrot.lane.b32.xlu1 %v27_v5, %s69_s11 }
  0x14   :  { %40 = vrot.lane.b32.xlu2 %v39_v6, %s70_s12 }
  0x1a   :  { %46 = vrot.lane.b32.xlu0 %v45_v7, %s71_s13 }
  0x66   :  { %v35_v9 = vpop.permute.xlu2 %34  }
  0x67   :  { %55 = vst.msk [vmem:[%s118_s1 + $0x5] sm:$0x1] %vm7_vm0, %v35_v9  }
  0x6e   :  { %v41_v10 = vpop.permute.xlu2 %40  }
  0x6f   :  { %56 = vst.msk [vmem:[%s118_s1 + $0x6] sm:$0x1] %vm7_vm0, %v41_v10  }
  0x7c   :  { %v11_v11 = vpop.permute.xlu0 %10  }
  0x7d   :  { %v23_v12 = vpop.permute.xlu1 %22   ;;  %51 = vst.msk [vmem:[%s118_s1 + $0x1] sm:$0x1] %vm7_vm0, %v11_v11  }
  0x7e   :  { %53 = vst.msk [vmem:[%s118_s1 + $0x3] sm:$0x1] %vm7_vm0, %v23_v12  }
  0x84   :  { %v17_v13 = vpop.permute.xlu0 %16  }
  0x85   :  { %v29_v14 = vpop.permute.xlu1 %28   ;;  %52 = vst.msk [vmem:[%s118_s1 + $0x2] sm:$0x1] %vm7_vm0, %v17_v13  }
  0x86   :  { %54 = vst.msk [vmem:[%s118_s1 + $0x4] sm:$0x1] %vm7_vm0, %v29_v14  }
  0x8c   :  { %v47_v15 = vpop.permute.xlu0 %46  }
  0x8d   :  { %57 = vst.msk [vmem:[%s118_s1 + $0x7] sm:$0x1] %vm7_vm0, %v47_v15  }

// kernel: nvib_forward.2
= control target key start
LH: loop header
LB: loop body
LE: loop exit
PB: predicated region body
PF: predicated region fallthrough
CT: control target
= control target key end

     0   :  { %11 = vsyncpa [#allocation3], 0  ;;  %s624_s18 = smov 0   ;;  %s664_s0 = inlined_call_operand.vmem [shape: f32[16,32], index: 0, kind: input, shape index: {}]   ;;  %s665_s1 = inlined_call_operand.hbm [shape: bf16[32,384], index: 1, kind: input, shape index: {}]   ;;  %s666_s2 = inlined_call_operand.vmem [shape: f32[1,384], index: 2, kind: input, shape index: {}]   ;;  %s667_s3 = inlined_call_operand.vmem [shape: f32[16,32], index: 3, kind: output, shape index: {0}]   ;;  %s668_s4 = inlined_call_operand.vmem [shape: f32[16,32], index: 4, kind: output, shape index: {1}]   ;;  %s669_s5 = inlined_call_operand.vmem [shape: f32[16,128], index: 5, kind: output, shape index: {2}]  }
   0x1 LB: > { %s179_s21 = sshll.u32 %s665_s1, 4  ;;  %s482_s22 = sadd.s32 4294967295, %s589_s18   ;;  %s589_s18 = sphi %s624_s18, %s17_s18   ;;  %s180_s21 = int_to_ptr.hbm [resolvable:$true] %s179_s21 }
   0x2   : > { %p484_p0 = scmp.ge.s32.totalorder %s589_s18, 1  ;;  %p168_p1 = scmp.lt.s32.totalorder %s589_s18, 3 }
   0x3   : > { %p536_p2 = scmp.eq.s32.totalorder %s482_s22, 0  ;;  %s591_s23 = smov [#allocation2]  }
   0x4   : > { %p169_p3 = pnand %p484_p0, %p168_p1  ;;  %s181_s24 = sshll.u32 %s591_s23, 4  ;;  %s182_s24 = int_to_ptr.vmem [resolvable:$true] %s181_s24 }
   0x5   : > { %s592_s25 = smov 192   ;;  %s593_s26 = smov 12  }
   0x6   : > { %p532_p4 = pneg %p169_p3  ;;  %207 = sbr.rel (%p169_p3) target bundleno = 164 (0xa4), region = 32 }
   0x8   : > { %p533_p5 = pnand %p536_p2, %p532_p4 }
   0xa   : > { %535 = dma.hbm_to_vmem [thread:$0]  (!%p533_p5), %s180_s21, 768, %s182_s24, [#allocation3], %s592_s25, %s592_s25, %s593_s26  }
   0xb   : > { %584 = dma.done.wait (%p536_p2), [#allocation3], 768  }
   0xc   : > { %586 = vsyncadd (%p536_p2), [#allocation3], 4294966528  ;;  %p242_p6 = scmp.lt.s32.totalorder %s482_s22, 1  ;;  %v507_v0 = vld [vmem:[#allocation2 + $0x18] sm:$0xf]  ;;  %vm309_vm0 = vcmask 261120  }
   0xd   : > { %v526_v1 = vld [vmem:[#allocation2 + $0x20] sm:$0xf0]  ;;  %v525_v2 = vld [vmem:[#allocation2 + $0x1c] sm:$0xf]  ;;  %v509_v4 = vld [vmem:[#allocation2 + $0x24] sm:$0xf0] }
   0xe   : > { %s671_s22 = smov (!%p242_p6, %s482_s22), 1  ;;  %v508_v3 = vor.u32 %v526_v1, %v507_v0  ;;  %v515_v5 = vld [vmem:[#allocation2 + $0x20] sm:$0xf]  ;;  %v527_v6 = vld [vmem:[#allocation2 + $0x28] sm:$0xf0]  ;;  %v512_v7 = vor.u32 %v525_v2, %v509_v4 }
   0xf   : > { %s635_s27 = sshll.u32 %s671_s22, 3  ;;  %v516_v8 = vor.u32 %v527_v6, %v515_v5  ;;  %v495_v9 = vld [vmem:[#allocation2] sm:$0xf]  ;;  %v523_v10 = vld [vmem:[#allocation2 + $0x8] sm:$0xf0] }
  0x10   : > { %s245_s30 = scalar_lea.vmem %s664_s0, %s635_s27  ;;  %v522_v11 = vld [vmem:[#allocation2 + $0x4] sm:$0xf]  ;;  %319 = vmatpush.bf16.msra.mxu0 %v508_v3  ;;  %v496_v12 = vor.u32 %v523_v10, %v495_v9  ;;  %v497_v13 = vld [vmem:[#allocation2 + $0xc] sm:$0xf0]  ;;  %v503_v14 = vld [vmem:[#allocation2 + $0x8] sm:$0xf]  ;;  %332 = vmatpush.bf16.msra.mxu1 %v512_v7  ;;  %s249_s10 = scalar_lea.vmem %s667_s3, %s635_s27 }
  0x11   : > { %v524_v15 = vld [vmem:[#allocation2 + $0x10] sm:$0xf0]  ;;  %345 = vmatpush.bf16.msra.mxu2 %v516_v8  ;;  %v500_v16 = vor.u32 %v522_v11, %v497_v13  ;;  %v259_v18 = vld [vmem:[%s245_s30] sm:$0xff]  ;;  %s253_s13 = scalar_lea.vmem %s668_s4, %s635_s27  ;;  %s257_s16 = scalar_lea.vmem %s669_s5, %s635_s27 }
  0x12   : > { %v504_v17 = vor.u32 %v524_v15, %v503_v14  ;;  %v260_v19 = vpack.c.bf16 %v259_v18, %v259_v18  ;;  %v269_v20 = vld [vmem:[%s666_s2] sm:$0x7] }
  0x13   : > { %v271_v21 = vperm.slane %v269_v20, 0  ;;  %v272_v22 = vperm.slane %v269_v20, 1  ;;  %v273_v27 = vperm.slane %v269_v20, 2 }
  0x14   : > { %320 = vmatpush.bf16.msra.mxu0 %v496_v12  ;;  %333 = vmatpush.bf16.msra.mxu1 %v500_v16 }
  0x15   : > { %346 = vmatpush.bf16.msra.mxu2 %v504_v17 }
  0x17   : > { %517 = vmatmul.msk.bf16.vlgmr.msra.gmra.mxu0 %vm309_vm0, %v260_v19  ;;  %518 = vmatmul.msk.bf16.vlgmr.msra.gmra.mxu1 %vm309_vm0, %v260_v19 }
  0x18   : > { %519 = vmatmul.msk.bf16.vlgmr.msra.gmra.mxu2 %vm309_vm0, %v260_v19 }
  0x94   : > { %v322_v23 = vpop.f32.mrf.mxu0  ;;  %v335_v25 = vpop.f32.mrf.mxu1 }
  0x95   : > { %v323_v24 = vadd.f32 %v322_v23, %v271_v21  ;;  %v336_v26 = vadd.f32 %v335_v25, %v272_v22 }
  0x97   : > { %352 = vst.msk [vmem:[%s249_s10] sm:$0xff] %vm309_vm0, %v323_v24 }
  0x98   : > { %353 = vst.msk [vmem:[%s253_s13] sm:$0xff] %vm309_vm0, %v336_v26 }
  0x9b   : > { %v348_v28 = vpop.f32.mrf.mxu2 }
  0x9c   : > { %v349_v29 = vadd.f32 %v348_v28, %v273_v27  ;;  %v324_v30 = vpop.f32.mrf.mxu0  ;;  %v337_v31 = vpop.f32.mrf.mxu1 }
  0x9e   : > { %354 = vst [vmem:[%s257_s16] sm:$0xff] %v349_v29 }
  0xa3   : > { %v350_v32 = vpop.f32.mrf.mxu2 }
  0xa4 PF: > { %s17_s18 = sadd.s32 1, %s589_s18  }
  0xa5   : > { %p14_p7 = scmp.ge.s32.totalorder %s17_s18, 4  }
  0xa7   :  { %16 = sbr.rel (!%p14_p7) target bundleno = 1 (0x1), region = 91 }
  0xac   :  { %402 = vsyncpa [#allocation3], 1 }
  0xad   :  { %404 = vsyncpa [#allocation3 + $0x1], 1 }

// kernel: nvib_forward.3
= control target key start
LH: loop header
LB: loop body
LE: loop exit
PB: predicated region body
PF: predicated region fallthrough
CT: control target
= control target key end

     0   :  { %v107_v6 = vmov 0   ;;  %vm33_vm5 = vcmask 66560   ;;  %v108_v14 = vmov 1   ;;  %v109_v19 = vmov 0.0   ;;  %s154_s0 = inlined_call_operand.vmem [shape: f32[2,9], index: 0, kind: input, shape index: {}]   ;;  %s155_s1 = inlined_call_operand.vmem [shape: s8[2,9], index: 1, kind: input, shape index: {}]   ;;  %s156_s2 = inlined_call_operand.vmem [shape: f32[2,9], index: 2, kind: output, shape index: {0}]   ;;  %s157_s3 = inlined_call_operand.vmem [shape: f32[2,128], index: 3, kind: output, shape index: {1}]  }
   0x1   :  { %v17_v0 = vld [vmem:[%s154_s0] sm:$0x3]  ;;  %v69_v15 = vpack.c.b16 1, %v108_v14  ;;  %v81_v42 = vlaneseq }
   0x2   :  { %v18_v1 = vmul.f32 1.442695, %v17_v0  ;;  %v15_v5 = vld [vmem:[%s155_s1] sm:$0x1] }
   0x3   :  { %vm16_vm2 = vnez %v15_v5  ;;  %v70_v16 = vpack.c.b8 %v69_v15, %v69_v15  ;;  %v82_v43 = vand.u32 127, %v81_v42 }
   0x4   :  { %103 = vpow2.f32 %v18_v1  ;;  %v54_v27 = vsel %vm16_vm2, 16843009, %v107_v6 }
   0x5   :  { %vm71_vm7 = vnez %v70_v16  ;;  %v55_v31 = vunpack.c.0.s8 %v54_v27 }
   0x6   :  { %vm72_vm8 = vmxor %vm16_vm2, %vm71_vm7 }
   0x7   :  { %v73_v17 = vsel %vm72_vm8, 16843009, %v107_v6  ;;  %vm56_vm14 = vcmp.ne.s32.totalorder %v55_v31, 0 }
   0x8   :  { %v74_v18 = vunpack.c.0.s8 %v73_v17 }
   0xa   :  { %v133_v2 = vpop.eup %103  ;;  %vm75_vm9 = vcmp.ne.s32.totalorder %v74_v18, 0 }
   0xb   :  { %v20_v3 = vmax.f32 %v133_v2, 1e-14  ;;  %v99_v20 = vsel %vm75_vm9, 1.0, %v109_v19  ;;  %v57_v40 = vsel %vm56_vm14, 0.0, %v133_v2 }
   0xc   :  { %v78_v21 = vsel %vm33_vm5, %v99_v20, 0.0  ;;  %v58_v41 = vsel %vm33_vm5, %v57_v40, 0.0 }
   0xd   :  { %vm21_vm0 = vcmp.gt.f32.partialorder %v20_v3, 0.1 }
   0xe   :  { %v22_v4 = vsel %vm21_vm0, %v20_v3, 0.0  ;;  %vm85_vm0 = vcmp.eq.s32.totalorder %v82_v43, 2 }
   0xf   :  { %vm23_vm1 = vcmp.le.f32.partialorder %v22_v4, 0.0 }
  0x10   :  { %v24_v7 = vsel %vm23_vm1, 1, %v107_v6  ;;  %vm84_vm1 = vcmp.eq.s32.totalorder %v82_v43, 1 }
  0x11   :  { %v25_v8 = vpack.c.b16 %v24_v7, %v24_v7 }
  0x13   :  { %v26_v9 = vpack.c.b8 %v25_v8, %v25_v8 }
  0x15   :  { %vm27_vm3 = vnez %v26_v9 }
  0x16   :  { %vm28_vm4 = vmor %vm16_vm2, %vm27_vm3  ;;  %vm83_vm2 = vcmp.eq.s32.totalorder %v82_v43, 0 }
  0x17   :  { %v29_v10 = vsel %vm28_vm4, 16843009, %v107_v6 }
  0x18   :  { %v30_v11 = vunpack.c.0.s8 %v29_v10 }
  0x1a   :  { %vm31_vm6 = vcmp.ne.s32.totalorder %v30_v11, 0 }
  0x1b   :  { %v32_v12 = vsel %vm31_vm6, 0.0, %v22_v4 }
  0x1c   :  { %v34_v13 = vsel %vm33_vm5, %v32_v12, 0.0 }
  0x1d   :  { %35 = vadd.xlane.f32.xlu0 %v34_v13 }
  0x25   :  { %79 = vadd.xlane.f32.xlu0 %v78_v21 }
  0x90   :  { %v36_v22 = vpop.xlane.xlu0 %35 }
  0x91   :  { %v37_v23 = vadd.f32 1e-14, %v36_v22 }
  0x93   :  { %105 = vrcp.f32 %v37_v23  ;;  %v49_v28 = vand.u32 2147483648, %v37_v23  ;;  %v47_v30 = vand.u32 2147483647, %v37_v23  ;;  %vm43_vm11 = vweird.f32 %v37_v23 }
  0x95   :  { %v50_v33 = vor.u32 1.1754944e-38, %v49_v28  ;;  %vm48_vm13 = vcmp.eq.f32.partialorder %v47_v30, 8.507059e+37 }
  0x98   :  { %v80_v45 = vpop.xlane.xlu0 %79 }
  0x99   :  { %v106_v24 = vpop.eup %105  ;;  %v86_v46 = vsel %vm85_vm0, %v80_v45, 0.0 }
  0x9a   :  { %v39_v25 = vmul.f32 %v106_v24, %v37_v23  ;;  %vm44_vm10 = vweird.f32 %v106_v24 }
  0x9b   :  { %vm45_vm12 = vmor %vm43_vm11, %vm44_vm10 }
  0x9c   :  { %v40_v26 = vsub.f32 1.0, %v39_v25 }
  0x9e   :  { %v41_v29 = vmul.f32 %v106_v24, %v40_v26 }
  0xa0   :  { %v42_v32 = vadd.f32 %v106_v24, %v41_v29 }
  0xa2   :  { %v46_v34 = vsel %vm45_vm12, %v106_v24, %v42_v32 }
  0xa3   :  { %v51_v35 = vsel %vm48_vm13, %v50_v33, %v46_v34 }
  0xa4   :  { %v52_v36 = vmul.f32 %v51_v35, %v32_v12 }
  0xa6   :  { %v61_v37 = vsel %vm56_vm14, 0.0, %v52_v36  ;;  %53 = vst.msk [vmem:[%s156_s2] sm:$0x3] %vm33_vm5, %v52_v36 }
  0xa7   :  { %vm62_vm15 = vcmp.ne.f32.partialorder %v61_v37, 0.0 }
  0xa8   :  { %v98_v38 = vsel %vm62_vm15, 1.0, %v109_v19 }
  0xa9   :  { %v65_v39 = vsel %vm33_vm5, %v98_v38, 0.0 }
  0xaa   :  { %66 = vadd.xlane.f32.xlu1 %v65_v39 }
  0xb2   :  { %59 = vadd.xlane.f32.xlu1 %v58_v41 }
 0x11d   :  { %v67_v44 = vpop.xlane.xlu1 %66 }
 0x11e   :  { %v87_v47 = vsel %vm84_vm1, %v67_v44, %v86_v46 }
 0x125   :  { %v60_v48 = vpop.xlane.xlu1 %59 }
 0x126   :  { %v88_v49 = vsel %vm83_vm2, %v60_v48, %v87_v47 }
 0x127   :  { %89 = vst [vmem:[%s157_s3] sm:$0x3] %v88_v49 }

</bundles_post_ra>
